<compile_context>
chip_gen: v6e
topology: v6e:2x2x1
jax: 0.10.0
libtpu: 0.0.40
codegen_flags: <defaults>
</compile_context>

<pallas_src>
import functools

import jax
import jax.numpy as jnp
from jax.experimental import pallas as pl
from jax.experimental.pallas import tpu as pltpu


# ---------------------------------------------------------------------------
# Kernel
# ---------------------------------------------------------------------------
def _aspp_kernel(x_ref, w_ref, shift_ref, o_ref, *,
                 tile_h, w_out, c_in, kh_sz, kw_sz, dilation):
    # x_ref:     (1, tile_h + dilation*(KH-1), Wp, Cin)  bf16  (row tile incl. halo)
    # w_ref:     (KH*KW*Cin, Cpad)                       bf16  (BN scale folded in)
    # shift_ref: (1, Cpad)                               f32   (folded BN shift)
    # o_ref:     (1, tile_h, Wout, Cpad)                 f32
    c_pad = o_ref.shape[-1]

    # im2col: gather the KHxKW dilated taps and pack them along the contraction axis.
    slabs = []
    for kh in range(kh_sz):
        for kw in range(kw_sz):
            sl = x_ref[0,
                       kh * dilation: kh * dilation + tile_h,
                       kw * dilation: kw * dilation + w_out,
                       :]                                  # (tile_h, Wout, Cin)
            slabs.append(sl)
    patches = jnp.concatenate(slabs, axis=-1)              # (tile_h, Wout, KH*KW*Cin)
    patches = patches.reshape(tile_h * w_out, kh_sz * kw_sz * c_in)

    # Single MXU matmul, f32 accumulation.
    acc = jnp.dot(patches, w_ref[...],
                  preferred_element_type=jnp.float32)      # (tile_h*Wout, Cpad)

    # BN shift + ReLU in f32 (scale already folded into the weight).
    y = jnp.maximum(acc + shift_ref[...], 0.0)
    o_ref[...] = y.reshape(1, tile_h, w_out, c_pad).astype(o_ref.dtype)


# ---------------------------------------------------------------------------
# Wrapper helpers
# ---------------------------------------------------------------------------
def _fold_bn_and_prepare(x_nchw, weight_oihw, gamma, beta, mean, var,
                         *, padding, eps):
    """NCHW->NHWC, pad spatially, fold BN scale into the weight, build (K', Cout) weight."""
    Cout, Cin, KH, KW = weight_oihw.shape

    scale = gamma.astype(jnp.float32) / jnp.sqrt(var.astype(jnp.float32) + eps)
    shift = (beta.astype(jnp.float32) - mean.astype(jnp.float32) * scale)

    w_folded = weight_oihw.astype(jnp.float32) * scale[:, None, None, None]  # (O,I,KH,KW)
    w_hwio = jnp.transpose(w_folded, (2, 3, 1, 0))                           # (KH,KW,Cin,Cout)
    w2 = w_hwio.reshape(KH * KW * Cin, Cout).astype(jnp.bfloat16)            # rows: (kh,kw,cin)

    x_nhwc = jnp.transpose(x_nchw, (0, 2, 3, 1)).astype(jnp.bfloat16)
    x_pad = jnp.pad(x_nhwc, ((0, 0), (padding, padding), (padding, padding), (0, 0)))
    return x_pad, w2, shift


def _pick_row_tile(hout, wout, cpad, budget_bytes=4 << 20):
    """Largest divisor of hout whose output block fits the budget; prefer >=2 tiles."""
    cands = [t for t in range(1, hout + 1)
             if hout % t == 0 and t * wout * cpad * 4 <= budget_bytes]
    multi = [t for t in cands if hout // t >= 2]
    return max(multi) if multi else max(cands)


# ---------------------------------------------------------------------------
# Forward (Pallas)
# ---------------------------------------------------------------------------
def aspp_forward(x_nchw, weight_oihw, bn_gamma, bn_beta, bn_mean, bn_var,
                 *, padding, dilation, eps=1e-5):
    N, Cin, H, W = x_nchw.shape
    Cout, _, KH, KW = weight_oihw.shape

    x_pad, w2, shift = _fold_bn_and_prepare(
        x_nchw, weight_oihw, bn_gamma, bn_beta, bn_mean, bn_var,
        padding=padding, eps=eps)

    Hp, Wp = H + 2 * padding, W + 2 * padding
    halo_h = dilation * (KH - 1)
    Hout = Hp - halo_h
    Wout = Wp - dilation * (KW - 1)

    # Lane-dense channel padding (output last dim multiple of 128).
    Cpad = ((Cout + 127) // 128) * 128
    w2p = jnp.pad(w2, ((0, 0), (0, Cpad - Cout)))
    shiftp = jnp.pad(shift, (0, Cpad - Cout)).reshape(1, Cpad).astype(jnp.float32)

    # Row tiling with halo materialized via a row gather (blocks stay rectangular).
    tile_h = _pick_row_tile(Hout, Wout, Cpad)
    n_row_tiles = Hout // tile_h
    tile_h_in = tile_h + halo_h
    row_idx = (jnp.arange(n_row_tiles, dtype=jnp.int32)[:, None] * tile_h
               + jnp.arange(tile_h_in, dtype=jnp.int32)[None, :])       # (HT, tile_h_in)
    x_tiles = jnp.take(x_pad, row_idx, axis=1)                          # (N,HT,tile_h_in,Wp,Cin)
    x_tiles = x_tiles.reshape(N * n_row_tiles, tile_h_in, Wp, Cin)

    kernel = functools.partial(_aspp_kernel, tile_h=tile_h, w_out=Wout,
                               c_in=Cin, kh_sz=KH, kw_sz=KW, dilation=dilation)

    out_tiles = pl.pallas_call(
        kernel,
        out_shape=jax.ShapeDtypeStruct((N * n_row_tiles, tile_h, Wout, Cpad),
                                       jnp.float32),
        grid_spec=pltpu.PrefetchScalarGridSpec(
            num_scalar_prefetch=0,
            grid=(N * n_row_tiles,),
            in_specs=[
                pl.BlockSpec((1, tile_h_in, Wp, Cin), lambda s: (s, 0, 0, 0)),
                pl.BlockSpec((KH * KW * Cin, Cpad), lambda s: (0, 0)),
                pl.BlockSpec((1, Cpad), lambda s: (0, 0)),
            ],
            out_specs=pl.BlockSpec((1, tile_h, Wout, Cpad), lambda s: (s, 0, 0, 0)),
        ),
        compiler_params=pltpu.CompilerParams(
            dimension_semantics=("parallel",),
            vmem_limit_bytes=32 * 1024 * 1024),
    )(x_tiles, w2p, shiftp)

    out_nhwc = out_tiles.reshape(N, Hout, Wout, Cpad)[..., :Cout]
    # NHWC -> NCHW to match the PyTorch module's output convention.
    return jnp.transpose(out_nhwc, (0, 3, 1, 2))


# ---------------------------------------------------------------------------
# Pure-JAX reference (same bf16 operands / f32 accumulation) for verification
# ---------------------------------------------------------------------------
def aspp_reference(x_nchw, weight_oihw, bn_gamma, bn_beta, bn_mean, bn_var,
                   *, padding, dilation, eps=1e-5):
    N, Cin, H, W = x_nchw.shape
    Cout, _, KH, KW = weight_oihw.shape
    x_pad, w2, shift = _fold_bn_and_prepare(
        x_nchw, weight_oihw, bn_gamma, bn_beta, bn_mean, bn_var,
        padding=padding, eps=eps)
    Hp, Wp = H + 2 * padding, W + 2 * padding
    Hout = Hp - dilation * (KH - 1)
    Wout = Wp - dilation * (KW - 1)

    slabs = []
    for kh in range(KH):
        for kw in range(KW):
            slabs.append(x_pad[:, kh * dilation: kh * dilation + Hout,
                               kw * dilation: kw * dilation + Wout, :])
    patches = jnp.concatenate(slabs, axis=-1).astype(jnp.float32)   # (N,Hout,Wout,KH*KW*Cin)
    y = jnp.einsum("nhwk,kc->nhwc", patches, w2.astype(jnp.float32))
    y = jnp.maximum(y + shift, 0.0)
    return jnp.transpose(y, (0, 3, 1, 2))


# ---------------------------------------------------------------------------
if __name__ == "__main__":
    # module hyper-parameters (typical ASPP branch)
    inplanes, planes = 4, 8
    kernel_size, padding, dilation = 3, 2, 2

    N, H, W = 2, 16, 16

    key = jax.random.PRNGKey(0)
    kx, kw = jax.random.split(key)

    # input, NCHW like PyTorch
    x = jax.random.normal(kx, (N, inplanes, H, W), dtype=jnp.float32)

    # Conv2d weight (Cout, Cin, KH, KW), kaiming_normal_ (fan_in, gain=sqrt(2))
    fan_in = inplanes * kernel_size * kernel_size
    std = (2.0 / fan_in) ** 0.5
    weight = std * jax.random.normal(
        kw, (planes, inplanes, kernel_size, kernel_size), dtype=jnp.float32)

    # BatchNorm2d params as initialized by the module: gamma=1, beta=0,
    # running_mean=0, running_var=1
    bn_gamma = jnp.ones((planes,), jnp.float32)
    bn_beta = jnp.zeros((planes,), jnp.float32)
    bn_mean = jnp.zeros((planes,), jnp.float32)
    bn_var = jnp.ones((planes,), jnp.float32)

    out = aspp_forward(x, weight, bn_gamma, bn_beta, bn_mean, bn_var,
                       padding=padding, dilation=dilation)
    out = jax.block_until_ready(out)

    # sanity: output shape matches PyTorch conv arithmetic and ReLU holds
    assert out.shape == (N, planes, H, W), out.shape
    assert bool(jnp.all(out >= 0.0))

    # numeric check against a pure-JAX reference using identical bf16 operands
    ref = aspp_reference(x, weight, bn_gamma, bn_beta, bn_mean, bn_var,
                         padding=padding, dilation=dilation)
    max_err = float(jnp.max(jnp.abs(out - ref)))
    assert bool(jnp.allclose(out, ref, atol=2e-3, rtol=2e-3)), max_err

    print("KERNEL_OK")
</pallas_src>

<mosaic_0001>
module attributes {stable_mosaic.version = 11 : i64} {
  func.func @_aspp_kernel(%arg0: i32, %arg1: memref<1x12x20x4xbf16, #tpu.memory_space<vmem>>, %arg2: memref<36x128xbf16, #tpu.memory_space<vmem>>, %arg3: memref<1x128xf32, #tpu.memory_space<vmem>>, %arg4: memref<1x8x16x128xf32, #tpu.memory_space<vmem>>) attributes {dimension_semantics = [#tpu.dimension_semantics<parallel>], iteration_bounds = array<i64: 4>, scalar_prefetch = 0 : i64, scratch_operands = 0 : i64, tpu.core_type = #tpu.core_type<tc>, window_params = [{transform_indices = @transform_0, window_bounds = array<i64: 1, 12, 20, 4>}, {pipeline_mode = #tpu.pipeline_mode<synchronous>, transform_indices = @transform_1, window_bounds = array<i64: 36, 128>}, {pipeline_mode = #tpu.pipeline_mode<synchronous>, transform_indices = @transform_2, window_bounds = array<i64: 1, 128>}, {transform_indices = @transform_3, window_bounds = array<i64: 1, 8, 16, 128>}]} {
    %c0 = arith.constant 0 : index
    %c0_0 = arith.constant 0 : index
    %c0_1 = arith.constant 0 : index
    %c0_2 = arith.constant 0 : index
    %0 = vector.load %arg1[%c0, %c0_0, %c0_1, %c0_2] : memref<1x12x20x4xbf16, #tpu.memory_space<vmem>>, vector<1x8x16x4xbf16>
    %1 = vector.shape_cast %0 : vector<1x8x16x4xbf16> to vector<8x16x4xbf16>
    %c0_3 = arith.constant 0 : index
    %c0_4 = arith.constant 0 : index
    %c2 = arith.constant 2 : index
    %c0_5 = arith.constant 0 : index
    %2 = vector.load %arg1[%c0_3, %c0_4, %c2, %c0_5] : memref<1x12x20x4xbf16, #tpu.memory_space<vmem>>, vector<1x8x16x4xbf16>
    %3 = vector.shape_cast %2 : vector<1x8x16x4xbf16> to vector<8x16x4xbf16>
    %c0_6 = arith.constant 0 : index
    %c0_7 = arith.constant 0 : index
    %c4 = arith.constant 4 : index
    %c0_8 = arith.constant 0 : index
    %4 = vector.load %arg1[%c0_6, %c0_7, %c4, %c0_8] : memref<1x12x20x4xbf16, #tpu.memory_space<vmem>>, vector<1x8x16x4xbf16>
    %5 = vector.shape_cast %4 : vector<1x8x16x4xbf16> to vector<8x16x4xbf16>
    %c0_9 = arith.constant 0 : index
    %c2_10 = arith.constant 2 : index
    %c0_11 = arith.constant 0 : index
    %c0_12 = arith.constant 0 : index
    %6 = vector.load %arg1[%c0_9, %c2_10, %c0_11, %c0_12] : memref<1x12x20x4xbf16, #tpu.memory_space<vmem>>, vector<1x8x16x4xbf16>
    %7 = vector.shape_cast %6 : vector<1x8x16x4xbf16> to vector<8x16x4xbf16>
    %c0_13 = arith.constant 0 : index
    %c2_14 = arith.constant 2 : index
    %c2_15 = arith.constant 2 : index
    %c0_16 = arith.constant 0 : index
    %8 = vector.load %arg1[%c0_13, %c2_14, %c2_15, %c0_16] : memref<1x12x20x4xbf16, #tpu.memory_space<vmem>>, vector<1x8x16x4xbf16>
    %9 = vector.shape_cast %8 : vector<1x8x16x4xbf16> to vector<8x16x4xbf16>
    %c0_17 = arith.constant 0 : index
    %c2_18 = arith.constant 2 : index
    %c4_19 = arith.constant 4 : index
    %c0_20 = arith.constant 0 : index
    %10 = vector.load %arg1[%c0_17, %c2_18, %c4_19, %c0_20] : memref<1x12x20x4xbf16, #tpu.memory_space<vmem>>, vector<1x8x16x4xbf16>
    %11 = vector.shape_cast %10 : vector<1x8x16x4xbf16> to vector<8x16x4xbf16>
    %c0_21 = arith.constant 0 : index
    %c4_22 = arith.constant 4 : index
    %c0_23 = arith.constant 0 : index
    %c0_24 = arith.constant 0 : index
    %12 = vector.load %arg1[%c0_21, %c4_22, %c0_23, %c0_24] : memref<1x12x20x4xbf16, #tpu.memory_space<vmem>>, vector<1x8x16x4xbf16>
    %13 = vector.shape_cast %12 : vector<1x8x16x4xbf16> to vector<8x16x4xbf16>
    %c0_25 = arith.constant 0 : index
    %c4_26 = arith.constant 4 : index
    %c2_27 = arith.constant 2 : index
    %c0_28 = arith.constant 0 : index
    %14 = vector.load %arg1[%c0_25, %c4_26, %c2_27, %c0_28] : memref<1x12x20x4xbf16, #tpu.memory_space<vmem>>, vector<1x8x16x4xbf16>
    %15 = vector.shape_cast %14 : vector<1x8x16x4xbf16> to vector<8x16x4xbf16>
    %c0_29 = arith.constant 0 : index
    %c4_30 = arith.constant 4 : index
    %c4_31 = arith.constant 4 : index
    %c0_32 = arith.constant 0 : index
    %16 = vector.load %arg1[%c0_29, %c4_30, %c4_31, %c0_32] : memref<1x12x20x4xbf16, #tpu.memory_space<vmem>>, vector<1x8x16x4xbf16>
    %17 = vector.shape_cast %16 : vector<1x8x16x4xbf16> to vector<8x16x4xbf16>
    %18 = tpu.concatenate %1, %3, %5, %7, %9, %11, %13, %15, %17 in 2 : vector<8x16x4xbf16>, vector<8x16x4xbf16>, vector<8x16x4xbf16>, vector<8x16x4xbf16>, vector<8x16x4xbf16>, vector<8x16x4xbf16>, vector<8x16x4xbf16>, vector<8x16x4xbf16>, vector<8x16x4xbf16> -> vector<8x16x36xbf16>
    %19 = vector.shape_cast %18 : vector<8x16x36xbf16> to vector<128x36xbf16>
    %c0_33 = arith.constant 0 : index
    %c0_34 = arith.constant 0 : index
    %20 = vector.load %arg2[%c0_33, %c0_34] : memref<36x128xbf16, #tpu.memory_space<vmem>>, vector<36x128xbf16>
    %cst = arith.constant dense<0.000000e+00> : vector<128x128xf32>
    %21 = tpu.matmul %19, %20, %cst {dimension_numbers = #tpu.dot_dimension_numbers<[1], [0], [0], [1], [0, 0, 1, 1], [], []>} : vector<128x36xbf16>, vector<36x128xbf16>, vector<128x128xf32> -> vector<128x128xf32>
    %c0_35 = arith.constant 0 : index
    %c0_36 = arith.constant 0 : index
    %22 = vector.load %arg3[%c0_35, %c0_36] : memref<1x128xf32, #tpu.memory_space<vmem>>, vector<1x128xf32>
    %23 = vector.broadcast %22 : vector<1x128xf32> to vector<128x128xf32>
    %24 = arith.addf %21, %23 : vector<128x128xf32>
    %cst_37 = arith.constant 0.000000e+00 : f32
    %25 = vector.broadcast %cst_37 : f32 to vector<128x128xf32>
    %26 = arith.maximumf %24, %25 : vector<128x128xf32>
    %27 = vector.shape_cast %26 : vector<128x128xf32> to vector<1x8x16x128xf32>
    %c0_38 = arith.constant 0 : index
    %c0_39 = arith.constant 0 : index
    %c0_40 = arith.constant 0 : index
    %c0_41 = arith.constant 0 : index
    %28 = vector.load %arg4[%c0_38, %c0_39, %c0_40, %c0_41] : memref<1x8x16x128xf32, #tpu.memory_space<vmem>>, vector<1x8x16x128xf32>
    tpu.vector_store %arg4[%c0_38, %c0_39, %c0_40, %c0_41], %27 {strides = array<i32>} : memref<1x8x16x128xf32, #tpu.memory_space<vmem>>, vector<1x8x16x128xf32>,
    return
  }
  func.func @transform_0(%arg0: i32) -> (i32, i32, i32, i32) {
    %c0_i32 = arith.constant 0 : i32
    %c0_i32_0 = arith.constant 0 : i32
    %c0_i32_1 = arith.constant 0 : i32
    %c0_i32_2 = arith.constant 0 : i32
    return %arg0, %c0_i32, %c0_i32_0, %c0_i32_1 : i32, i32, i32, i32
  }
  func.func @transform_1(%arg0: i32) -> (i32, i32) {
    %c0_i32 = arith.constant 0 : i32
    %c0_i32_0 = arith.constant 0 : i32
    %c0_i32_1 = arith.constant 0 : i32
    return %c0_i32, %c0_i32_0 : i32, i32
  }
  func.func @transform_2(%arg0: i32) -> (i32, i32) {
    %c0_i32 = arith.constant 0 : i32
    %c0_i32_0 = arith.constant 0 : i32
    %c0_i32_1 = arith.constant 0 : i32
    return %c0_i32, %c0_i32_0 : i32, i32
  }
  func.func @transform_3(%arg0: i32) -> (i32, i32, i32, i32) {
    %c0_i32 = arith.constant 0 : i32
    %c0_i32_0 = arith.constant 0 : i32
    %c0_i32_1 = arith.constant 0 : i32
    %c0_i32_2 = arith.constant 0 : i32
    return %arg0, %c0_i32, %c0_i32_0, %c0_i32_1 : i32, i32, i32, i32
  }
}

</mosaic_0001>

<bundles_post_ra>
// kernel: tpu_custom_call.1
= control target key start
LH: loop header
LB: loop body
LE: loop exit
PB: predicated region body
PF: predicated region fallthrough
CT: control target
= control target key end

     0   :  { %8 = vsyncpa [#allocation3], 0  ;;  %s2490_s0 = inlined_call_operand.vmem [shape: bf16[4,12,20,4], index: 0, kind: input, shape index: {}]   ;;  %s2491_s1 = inlined_call_operand.vmem [shape: bf16[36,128], index: 1, kind: input, shape index: {}]   ;;  %s2492_s2 = inlined_call_operand.vmem [shape: f32[1,128], index: 2, kind: input, shape index: {}]   ;;  %s2493_s3 = inlined_call_operand.hbm [shape: f32[4,8,16,128], index: 3, kind: output, shape index: {}]  }
   0x1   :  { %10 = vsyncpa [#allocation3 + $0x1], 0  ;;  %s1942_s12 = smov 0   ;;  %s1944_s13 = smov 0  }
   0x2   :  { %s1946_s14 = smov 0   ;;  %s1948_s15 = smov 0  }
   0x3 LB: > { %s1963_s16 = sadd.s32 4294967295, %s1910_s15   ;;  %s1395_s17 = sadd.s32 4294967294, %s1910_s15   ;;  %s1910_s15 = sphi %s1948_s15, %s2499_s15   ;;  %s1906_s14 = sphi %s1946_s14, %s2498_s14   ;;  %s1902_s13 = sphi %s1944_s13, %s2497_s13   ;;  %s1898_s12 = sphi %s1942_s12, %s2496_s12  }
   0x4   : > { %s1967_s18 = sadd.s32 1, %s1910_s15   ;;  %s91_s19 = sadd.s32 1, %s1906_s14 }
   0x5   : > { %s88_s20 = ssub.s32 %s1910_s15, %s1967_s18  ;;  %p101_p0 = scmp.ne.s32.totalorder %s1906_s14, %s1902_s13 }
   0x6   : > { %p89_p1 = scmp.eq.s32.totalorder %s88_s20, 0  ;;  %p102_p2 = scmp.eq.s32.totalorder %s1963_s16, 3 }
   0x7   : > { %p107_p3 = scmp.ne.s32.totalorder %s1902_s13, %s1898_s12  ;;  %p108_p4 = scmp.eq.s32.totalorder %s1395_s17, 3 }
   0x8   : > { %s1978_s21 = scalar_select %p89_p1, %s1906_s14, %s91_s19  }
   0x9   : > { %p1980_p5 = por %p102_p2, %p101_p0  ;;  %p1984_p6 = por %p108_p4, %p107_p3 }
   0xa   : > { %p1398_p7 = scmp.ge.s32.totalorder %s1910_s15, 1  ;;  %p140_p8 = scmp.lt.s32.totalorder %s1910_s15, 5 }
   0xc   : > { %p141_p9 = pnand %p1398_p7, %p140_p8 }
   0xd   : > { %p164_p10 = scmp.lt.s32.totalorder (!%p141_p9), %s1963_s16, 3  ;;  %s1912_s29 = smov (!%p141_p9), 4  }
   0xe   : > { %144 = sbr.rel (%p141_p9) target bundleno = 488 (0x1e8), region = 32  ;;  %s1913_s30 = smov (!%p141_p9), 8  }
   0xf   : > { %s1914_s4 = smov (!%p141_p9), 12   ;;  %s1915_s5 = smov (!%p141_p9), 16  }
  0x10   : > { %s1916_s6 = smov (!%p141_p9), 20   ;;  %s1917_s7 = smov (!%p141_p9), 24  }
  0x11   : > { %s1918_s8 = smov (!%p141_p9), 28   ;;  %s1919_s9 = smov (!%p141_p9), 32  }
  0x12   : > { %s1920_s10 = smov (!%p141_p9), [#allocation2]  }
  0x13   : > { %s165_s24 = scalar_select %p164_p10, %s1963_s16, 3  ;;  %vm404_vm0 = vcmask 1046528   ;;  %vm493_vm1 = vcmask 1045504   ;;  %vm1186_vm2 = vcmask 1041408   ;;  %vm1023_vm3 = vcmask 64512  }
  0x14   : > { %vm998_vm4 = vcmask 31744   ;;  %vm1040_vm5 = vcmask 97280   ;;  %vm1057_vm6 = vcmask 130048   ;;  %vm1074_vm7 = vcmask 162816   ;;  %s1854_s11 = sshll.u32 %s1920_s10, 4  ;;  %s1855_s11 = int_to_ptr.vmem [resolvable:$false] %s1854_s11 }
  0x15   : > { %s1676_s25 = smul.u32 144, %s165_s24  ;;  %vm1091_vm8 = vcmask 195584   ;;  %vm1108_vm9 = vcmask 228352   ;;  %vm1125_vm10 = vcmask 261120   ;;  %vm1169_vm11 = vcmask 293888   ;;  %s1856_s17 = scalar_lea.vmem %s1855_s11, 4096 }
  0x17   : > { %s1995_s28 = scalar_lea.vmem %s2490_s0, %s1676_s25  ;;  %s161_s25 = sand.u32 1, %s1902_s13  }
  0x18   : > { %v173_v0 = vld [vmem:[%s1995_s28 + $0x10] sm:$0xf]  ;;  %v188_v1 = vld [vmem:[%s1995_s28 + $0xc] sm:$0xe]  ;;  %v2001_v4 = vld [vmem:[%s1995_s28 + $0x4] sm:$0xf] }
  0x19   : > { %v1507_v2 = vcombine.low %v188_v1, %v173_v0  ;;  %v1726_v3 = vld [vmem:[%s1995_s28 + $0x14] ss:$0 sps:$4 sm:$0x11]   ;;  %v186_v5 = vld [vmem:[%s1995_s28] sm:$0xe] }
  0x1a   : > { %v181_v6 = vld [vmem:[%s1995_s28 + $0x40] sm:$0xf]  ;;  %v409_v8 = vrot.slane %v1726_v3, 1  ;;  %v1505_v9 = vcombine.low %v186_v5, %v2001_v4  ;;  %v1728_v10 = vld [vmem:[%s1995_s28 + $0x8] ss:$0 sps:$4 sm:$0x11]  }
  0x1b   : > { %v408_v7 = vrot.slane %v1507_v2, 1  ;;  %v196_v11 = vld [vmem:[%s1995_s28 + $0x3c] sm:$0xe]  ;;  %v2009_v12 = vld [vmem:[%s1995_s28 + $0x34] sm:$0xf]  ;;  %v406_v15 = vrot.slane %v1728_v10, 1 }
  0x1c   : > { %v405_v14 = vrot.slane %v1505_v9, 1  ;;  %v1515_v16 = vcombine.low %v196_v11, %v181_v6  ;;  %v1730_v17 = vld [vmem:[%s1995_s28 + $0x44] ss:$0 sps:$4 sm:$0x11]   ;;  %v194_v18 = vld [vmem:[%s1995_s28 + $0x30] sm:$0xe] }
  0x1d   : > { %v410_v13 = vsel %vm404_vm0, %v408_v7, %v409_v8  ;;  %v210_v19 = vld [vmem:[%s1995_s28 + $0x30] sm:$0xc]  ;;  %v421_v22 = vrot.slane %v1730_v17, 1  ;;  %v1513_v23 = vcombine.low %v194_v18, %v2009_v12  ;;  %v1732_v24 = vld [vmem:[%s1995_s28 + $0x38] ss:$0 sps:$4 sm:$0x11]  }
  0x1e   : > { %431 = vrot.lane.b32.xlu1 %v410_v13, %s1912_s29  ;;  %v407_v20 = vsel %vm404_vm0, %v405_v14, %v406_v15  ;;  %v420_v21 = vrot.slane %v1515_v16, 1  ;;  %v1529_v25 = vcombine.low %v210_v19, %v2009_v12  ;;  %v1734_v26 = vld [vmem:[%s1995_s28 + $0x38] ss:$0 sps:$4 sm:$0x33]   ;;  %v418_v29 = vrot.slane %v1732_v24, 1 }
  0x1f   : > { %429 = vrot.lane.b32.xlu0 %v407_v20, %s1912_s29  ;;  %v417_v28 = vrot.slane %v1513_v23, 1  ;;  %v202_v30 = vld [vmem:[%s1995_s28] sm:$0xc]  ;;  %v507_v32 = vrot.slane %v1734_v26, 2  ;;  %v212_v36 = vld [vmem:[%s1995_s28 + $0x3c] sm:$0xc] }
  0x20   : > { %v422_v27 = vsel %vm404_vm0, %v420_v21, %v421_v22  ;;  %v506_v31 = vrot.slane %v1529_v25, 2  ;;  %v1521_v33 = vcombine.low %v202_v30, %v2001_v4  ;;  %v1736_v34 = vld [vmem:[%s1995_s28 + $0x8] ss:$0 sps:$4 sm:$0x33]   ;;  %v204_v37 = vld [vmem:[%s1995_s28 + $0xc] sm:$0xc]  ;;  %v1531_v41 = vcombine.low %v212_v36, %v181_v6 }
  0x21   : > { %v419_v35 = vsel %vm404_vm0, %v417_v28, %v418_v29  ;;  %v495_v40 = vrot.slane %v1736_v34, 2  ;;  %v1738_v42 = vld [vmem:[%s1995_s28 + $0x44] ss:$0 sps:$4 sm:$0x33]   ;;  %v1523_v43 = vcombine.low %v204_v37, %v173_v0  ;;  %v1409_v50 = vld [vmem:[%s1995_s28 + $0x48] sm:$0xf] }
  0x22   : > { %439 = vrot.lane.b32.xlu1 %v422_v27, %s1912_s29  ;;  %v508_v38 = vsel %vm493_vm1, %v506_v31, %v507_v32  ;;  %v494_v39 = vrot.slane %v1521_v33, 2  ;;  %v1740_v44 = vld [vmem:[%s1995_s28 + $0x14] ss:$0 sps:$4 sm:$0x33]   ;;  %v509_v46 = vrot.slane %v1531_v41, 2  ;;  %v510_v47 = vrot.slane %v1738_v42, 2 }
  0x23   : > { %437 = vrot.lane.b32.xlu0 %v419_v35, %s1912_s29  ;;  %v497_v48 = vrot.slane %v1523_v43, 2  ;;  %v498_v49 = vrot.slane %v1740_v44, 2  ;;  %v1410_v51 = vld [vmem:[%s1995_s28 + $0x4c] sm:$0xf]  ;;  %v1401_v53 = vld [vmem:[%s1995_s28 + $0x18] sm:$0xf] }
  0x24   : > { %v496_v45 = vsel %vm493_vm1, %v494_v39, %v495_v40  ;;  %v511_v52 = vsel %vm493_vm1, %v509_v46, %v510_v47  ;;  %v1402_v55 = vld [vmem:[%s1995_s28 + $0x1c] sm:$0xf]  ;;  %v1425_v56 = vld [vmem:[%s1995_s28 + $0x48] sm:$0xe]  ;;  %v1541_v57 = vcombine.low %v1409_v50, %v1410_v51  ;;  %v1411_v58 = vld [vmem:[%s1995_s28 + $0x54] sm:$0xf] }
  0x25   : > { %v499_v54 = vsel %vm493_vm1, %v497_v48, %v498_v49  ;;  %v1412_v59 = vld [vmem:[%s1995_s28 + $0x58] sm:$0xf]  ;;  %v1553_v60 = vcombine.low %v1425_v56, %v1410_v51  ;;  %v1746_v62 = vld [vmem:[%s1995_s28 + $0x50] ss:$0 sps:$4 sm:$0x11]   ;;  %v1537_v63 = vcombine.low %v1401_v53, %v1402_v55 }
  0x26   : > { %526 = vrot.lane.b32.xlu1 %v508_v38, %s1913_s30  ;;  %v1417_v61 = vld [vmem:[%s1995_s28 + $0x18] sm:$0xe]  ;;  %v1403_v0 = vld [vmem:[%s1995_s28 + $0x24] sm:$0xf]  ;;  %v1427_v1 = vld [vmem:[%s1995_s28 + $0x54] sm:$0xe]  ;;  %v1542_v6 = vcombine.low %v1411_v58, %v1412_v59 }
  0x27   : > { %518 = vrot.lane.b32.xlu0 %v496_v45, %s1913_s30  ;;  %v1404_v2 = vld [vmem:[%s1995_s28 + $0x28] sm:$0xf]  ;;  %v1545_v3 = vcombine.low %v1417_v61, %v1402_v55  ;;  %v1748_v5 = vld [vmem:[%s1995_s28 + $0x20] ss:$0 sps:$4 sm:$0x11]   ;;  %v650_v7 = vrot.slane %v1553_v60, 1  ;;  %v1555_v8 = vcombine.low %v1427_v1, %v1412_v59 }
  0x28   : > { %v1419_v9 = vld [vmem:[%s1995_s28 + $0x24] sm:$0xe]  ;;  %v651_v10 = vrot.slane %v1746_v62, 1  ;;  %v1750_v11 = vld [vmem:[%s1995_s28 + $0x5c] ss:$0 sps:$4 sm:$0x11]   ;;  %v1538_v14 = vcombine.low %v1403_v0, %v1404_v2 }
  0x29   : > { %v1441_v13 = vld [vmem:[%s1995_s28 + $0x48] sm:$0xc]  ;;  %v1547_v15 = vcombine.low %v1419_v9, %v1404_v2  ;;  %v1752_v16 = vld [vmem:[%s1995_s28 + $0x2c] ss:$0 sps:$4 sm:$0x11]   ;;  %v638_v17 = vrot.slane %v1545_v3, 1 }
  0x2a   : > { %528 = vrot.lane.b32.xlu1 %v511_v52, %s1913_s30  ;;  %v639_v18 = vrot.slane %v1748_v5, 1  ;;  %v1433_v19 = vld [vmem:[%s1995_s28 + $0x18] sm:$0xc]  ;;  %v653_v20 = vrot.slane %v1555_v8, 1  ;;  %v652_v21 = vsel %vm404_vm0, %v650_v7, %v651_v10  ;;  %v654_v22 = vrot.slane %v1750_v11, 1 }
  0x2b   : > { %520 = vrot.lane.b32.xlu0 %v499_v54, %s1913_s30  ;;  %v1569_v23 = vcombine.low %v1441_v13, %v1410_v51  ;;  %v1754_v24 = vld [vmem:[%s1995_s28 + $0x50] ss:$0 sps:$4 sm:$0x33]   ;;  %v641_v25 = vrot.slane %v1547_v15, 1  ;;  %v1561_v26 = vcombine.low %v1433_v19, %v1402_v55  ;;  %v1443_v27 = vld [vmem:[%s1995_s28 + $0x54] sm:$0xc] }
  0x2c   : > { %v640_v28 = vsel %vm404_vm0, %v638_v17, %v639_v18  ;;  %v642_v29 = vrot.slane %v1752_v16, 1  ;;  %v1756_v30 = vld [vmem:[%s1995_s28 + $0x20] ss:$0 sps:$4 sm:$0x33]   ;;  %v1435_v31 = vld [vmem:[%s1995_s28 + $0x24] sm:$0xc]  ;;  %v655_v32 = vsel %vm404_vm0, %v653_v20, %v654_v22  ;;  %v1571_v35 = vcombine.low %v1443_v27, %v1412_v59 }
  0x2d   : > { %v738_v33 = vrot.slane %v1569_v23, 2  ;;  %v739_v34 = vrot.slane %v1754_v24, 2  ;;  %v1758_v36 = vld [vmem:[%s1995_s28 + $0x5c] ss:$0 sps:$4 sm:$0x33]   ;;  %v726_v37 = vrot.slane %v1561_v26, 2  ;;  %v1563_v40 = vcombine.low %v1435_v31, %v1404_v2 }
  0x2e   : > { %582 = vrot.lane.b32.xlu1 %v1541_v57, %s1914_s4  ;;  %v643_v38 = vsel %vm404_vm0, %v641_v25, %v642_v29  ;;  %v727_v39 = vrot.slane %v1756_v30, 2  ;;  %v1760_v41 = vld [vmem:[%s1995_s28 + $0x2c] ss:$0 sps:$4 sm:$0x33]   ;;  %v741_v43 = vrot.slane %v1571_v35, 2  ;;  %v742_v44 = vrot.slane %v1758_v36, 2 }
  0x2f   : > { %574 = vrot.lane.b32.xlu0 %v1537_v63, %s1914_s4  ;;  %v740_v42 = vsel %vm493_vm1, %v738_v33, %v739_v34  ;;  %v729_v46 = vrot.slane %v1563_v40, 2  ;;  %v730_v47 = vrot.slane %v1760_v41, 2  ;;  %v1457_v49 = vld [vmem:[%s1995_s28 + $0x60] sm:$0xf]  ;;  %v1458_v50 = vld [vmem:[%s1995_s28 + $0x64] sm:$0xf] }
  0x30   : > { %v728_v45 = vsel %vm493_vm1, %v726_v37, %v727_v39  ;;  %v743_v48 = vsel %vm493_vm1, %v741_v43, %v742_v44  ;;  %v1473_v51 = vld [vmem:[%s1995_s28 + $0x60] sm:$0xe]  ;;  %v1449_v52 = vld [vmem:[%s1995_s28 + $0x30] sm:$0xf]  ;;  %v1450_v54 = vld [vmem:[%s1995_s28 + $0x34] sm:$0xf]  ;;  %v1581_v56 = vcombine.low %v1457_v49, %v1458_v50 }
  0x31   : > { %v731_v53 = vsel %vm493_vm1, %v729_v46, %v730_v47  ;;  %v1459_v55 = vld [vmem:[%s1995_s28 + $0x6c] sm:$0xf]  ;;  %v1593_v57 = vcombine.low %v1473_v51, %v1458_v50  ;;  %v1766_v58 = vld [vmem:[%s1995_s28 + $0x68] ss:$0 sps:$4 sm:$0x11]   ;;  %v1577_v62 = vcombine.low %v1449_v52, %v1450_v54 }
  0x32   : > { %584 = vrot.lane.b32.xlu1 %v1542_v6, %s1914_s4  ;;  %v1465_v59 = vld [vmem:[%s1995_s28 + $0x30] sm:$0xe]  ;;  %v1475_v61 = vld [vmem:[%s1995_s28 + $0x6c] sm:$0xe]  ;;  %v1451_v63 = vld [vmem:[%s1995_s28 + $0x3c] sm:$0xf] }
  0x33   : > { %576 = vrot.lane.b32.xlu0 %v1538_v14, %s1914_s4  ;;  %v2093_v60 = vld [vmem:[%s1995_s28 + $0x70] sm:$0xf]  ;;  %v1768_v0 = vld [vmem:[%s1995_s28 + $0x38] ss:$0 sps:$4 sm:$0x11]   ;;  %v1585_v2 = vcombine.low %v1465_v59, %v1450_v54  ;;  %v882_v6 = vrot.slane %v1593_v57, 1 }
  0x34   : > { %v2100_v1 = vld [vmem:[%s1995_s28 + $0x40] sm:$0xf]  ;;  %v1467_v3 = vld [vmem:[%s1995_s28 + $0x3c] sm:$0xe]  ;;  %v1582_v5 = vcombine.low %v1459_v55, %v2093_v60  ;;  %v1595_v7 = vcombine.low %v1475_v61, %v2093_v60  ;;  %v883_v8 = vrot.slane %v1766_v58, 1  ;;  %v871_v16 = vrot.slane %v1768_v0, 1 }
  0x35   : > { %v1770_v9 = vld [vmem:[%s1995_s28 + $0x74] ss:$0 sps:$4 sm:$0x11]   ;;  %v1578_v10 = vcombine.low %v1451_v63, %v2100_v1  ;;  %v1587_v11 = vcombine.low %v1467_v3, %v2100_v1  ;;  %v1772_v13 = vld [vmem:[%s1995_s28 + $0x44] ss:$0 sps:$4 sm:$0x11]  }
  0x36   : > { %670 = vrot.lane.b32.xlu1 %v652_v21, %s1915_s5  ;;  %v1489_v14 = vld [vmem:[%s1995_s28 + $0x60] sm:$0xc]  ;;  %v870_v15 = vrot.slane %v1585_v2, 1  ;;  %v1481_v17 = vld [vmem:[%s1995_s28 + $0x30] sm:$0xc]  ;;  %v885_v18 = vrot.slane %v1595_v7, 1  ;;  %v884_v21 = vsel %vm404_vm0, %v882_v6, %v883_v8 }
  0x37   : > { %662 = vrot.lane.b32.xlu0 %v640_v28, %s1915_s5  ;;  %v2115_v19 = vld [vmem:[%s1995_s28 + $0x4c] sm:$0xf]  ;;  %v198_v20 = vld [vmem:[%s1995_s28 + $0x48] sm:$0xe]  ;;  %v886_v22 = vrot.slane %v1770_v9, 1  ;;  %v1609_v23 = vcombine.low %v1489_v14, %v1458_v50  ;;  %v873_v25 = vrot.slane %v1587_v11, 1  ;;  %v1601_v26 = vcombine.low %v1481_v17, %v1450_v54 }
  0x38   : > { %v1774_v24 = vld [vmem:[%s1995_s28 + $0x68] ss:$0 sps:$4 sm:$0x33]   ;;  %v1776_v27 = vld [vmem:[%s1995_s28 + $0x38] ss:$0 sps:$4 sm:$0x33]   ;;  %v872_v28 = vsel %vm404_vm0, %v870_v15, %v871_v16  ;;  %v1517_v30 = vcombine.low %v198_v20, %v2115_v19 }
  0x39   : > { %v874_v29 = vrot.slane %v1772_v13, 1  ;;  %v1778_v31 = vld [vmem:[%s1995_s28 + $0x50] ss:$0 sps:$4 sm:$0x11]   ;;  %v190_v33 = vld [vmem:[%s1995_s28 + $0x18] sm:$0xe]  ;;  %v887_v34 = vsel %vm404_vm0, %v885_v18, %v886_v22 }
  0x3a   : > { %672 = vrot.lane.b32.xlu1 %v655_v32, %s1915_s5  ;;  %v2127_v32 = vld [vmem:[%s1995_s28 + $0x1c] sm:$0xf]  ;;  %v970_v35 = vrot.slane %v1609_v23, 2  ;;  %v971_v36 = vrot.slane %v1774_v24, 2  ;;  %v958_v37 = vrot.slane %v1601_v26, 2  ;;  %v423_v41 = vrot.slane %v1517_v30, 1 }
  0x3b   : > { %664 = vrot.lane.b32.xlu0 %v643_v38, %s1915_s5  ;;  %v959_v38 = vrot.slane %v1776_v27, 2  ;;  %v1491_v39 = vld [vmem:[%s1995_s28 + $0x6c] sm:$0xc]  ;;  %v875_v40 = vsel %vm404_vm0, %v873_v25, %v874_v29  ;;  %v1780_v43 = vld [vmem:[%s1995_s28 + $0x20] ss:$0 sps:$4 sm:$0x11]  }
  0x3c   : > { %v1483_v44 = vld [vmem:[%s1995_s28 + $0x3c] sm:$0xc]  ;;  %v1782_v46 = vld [vmem:[%s1995_s28 + $0x74] ss:$0 sps:$4 sm:$0x33]   ;;  %v972_v47 = vsel %vm493_vm1, %v970_v35, %v971_v36  ;;  %v412_v55 = vrot.slane %v1780_v43, 1 }
  0x3d   : > { %v2142_v49 = vld [vmem:[%s1995_s28 + $0x58] sm:$0xf]  ;;  %v200_v50 = vld [vmem:[%s1995_s28 + $0x54] sm:$0xe]  ;;  %v1603_v51 = vcombine.low %v1483_v44, %v2100_v1  ;;  %v192_v57 = vld [vmem:[%s1995_s28 + $0x24] sm:$0xe] }
  0x3e   : > { %758 = vrot.lane.b32.xlu1 %v740_v42, %s1916_s6  ;;  %v1509_v42 = vcombine.low %v190_v33, %v2127_v32  ;;  %v1784_v52 = vld [vmem:[%s1995_s28 + $0x44] ss:$0 sps:$4 sm:$0x33]   ;;  %v1519_v58 = vcombine.low %v200_v50, %v2142_v49  ;;  %v974_v61 = vrot.slane %v1782_v46, 2  ;;  %v214_v1 = vld [vmem:[%s1995_s28 + $0x48] sm:$0xc] }
  0x3f   : > { %750 = vrot.lane.b32.xlu0 %v728_v45, %s1916_s6  ;;  %v424_v45 = vrot.slane %v1778_v31, 1  ;;  %v961_v63 = vrot.slane %v1603_v51, 2  ;;  %v962_v3 = vrot.slane %v1784_v52, 2  ;;  %v206_v7 = vld [vmem:[%s1995_s28 + $0x18] sm:$0xc] }
  0x40   : > { %v411_v54 = vrot.slane %v1509_v42, 1  ;;  %v426_v6 = vrot.slane %v1519_v58, 1  ;;  %v1790_v11 = vld [vmem:[%s1995_s28 + $0x50] ss:$0 sps:$4 sm:$0x33]   ;;  %v1525_v17 = vcombine.low %v206_v7, %v2127_v32 }
  0x41   : > { %v425_v59 = vsel %vm404_vm0, %v423_v41, %v424_v45  ;;  %v216_v14 = vld [vmem:[%s1995_s28 + $0x54] sm:$0xc]  ;;  %v963_v15 = vsel %vm493_vm1, %v961_v63, %v962_v3  ;;  %v1792_v18 = vld [vmem:[%s1995_s28 + $0x20] ss:$0 sps:$4 sm:$0x33]   ;;  %v513_v23 = vrot.slane %v1790_v11, 2 }
  0x42   : > { %760 = vrot.lane.b32.xlu1 %v743_v48, %s1916_s6  ;;  %v1611_v48 = vcombine.low %v1491_v39, %v2093_v60  ;;  %v413_v2 = vsel %vm404_vm0, %v411_v54, %v412_v55  ;;  %v208_v20 = vld [vmem:[%s1995_s28 + $0x24] sm:$0xc]  ;;  %v1535_v24 = vcombine.low %v216_v14, %v2142_v49  ;;  %v1794_v25 = vld [vmem:[%s1995_s28 + $0x5c] ss:$0 sps:$4 sm:$0x33]   ;;  %v500_v27 = vrot.slane %v1525_v17, 2 }
  0x43   : > { %752 = vrot.lane.b32.xlu0 %v731_v53, %s1916_s6  ;;  %v960_v53 = vsel %vm493_vm1, %v958_v37, %v959_v38  ;;  %v1796_v30 = vld [vmem:[%s1995_s28 + $0x2c] ss:$0 sps:$4 sm:$0x33]   ;;  %v1413_v39 = vld [vmem:[%s1995_s28 + $0x60] sm:$0xf] }
  0x44   : > { %v973_v60 = vrot.slane %v1611_v48, 2  ;;  %v515_v33 = vrot.slane %v1535_v24, 2  ;;  %v504_v37 = vrot.slane %v1796_v30, 2  ;;  %v1429_v41 = vld [vmem:[%s1995_s28 + $0x60] sm:$0xe] }
  0x45   : > { %v1405_v43 = vld [vmem:[%s1995_s28 + $0x30] sm:$0xf]  ;;  %v1406_v44 = vld [vmem:[%s1995_s28 + $0x34] sm:$0xf]  ;;  %v1415_v46 = vld [vmem:[%s1995_s28 + $0x6c] sm:$0xf] }
  0x46   : > { %814 = vrot.lane.b32.xlu1 %v1581_v56, %s1917_s7  ;;  %v2150_v56 = vld [vmem:[%s1995_s28 + $0x28] sm:$0xf]  ;;  %v975_v8 = vsel %vm493_vm1, %v973_v60, %v974_v61  ;;  %v1421_v50 = vld [vmem:[%s1995_s28 + $0x30] sm:$0xe]  ;;  %v1407_v51 = vld [vmem:[%s1995_s28 + $0x3c] sm:$0xf] }
  0x47   : > { %806 = vrot.lane.b32.xlu0 %v1577_v62, %s1917_s7  ;;  %v1786_v62 = vld [vmem:[%s1995_s28 + $0x5c] ss:$0 sps:$4 sm:$0x11]   ;;  %v1511_v0 = vcombine.low %v192_v57, %v2150_v56  ;;  %v1527_v29 = vcombine.low %v208_v20, %v2150_v56  ;;  %v1802_v52 = vld [vmem:[%s1995_s28 + $0x68] ss:$0 sps:$4 sm:$0x11]   ;;  %v1549_v57 = vcombine.low %v1421_v50, %v1406_v44 }
  0x48   : > { %v427_v9 = vrot.slane %v1786_v62, 1  ;;  %v2202_v54 = vld [vmem:[%s1995_s28 + $0x40] sm:$0xf]  ;;  %v1431_v55 = vld [vmem:[%s1995_s28 + $0x6c] sm:$0xe]  ;;  %v657_v62 = vrot.slane %v1802_v52, 1 }
  0x49   : > { %v414_v13 = vrot.slane %v1511_v0, 1  ;;  %v503_v36 = vrot.slane %v1527_v29, 2  ;;  %v1804_v58 = vld [vmem:[%s1995_s28 + $0x38] ss:$0 sps:$4 sm:$0x11]  }
  0x4a   : > { %816 = vrot.lane.b32.xlu1 %v1582_v5, %s1917_s7  ;;  %v1788_v5 = vld [vmem:[%s1995_s28 + $0x2c] ss:$0 sps:$4 sm:$0x11]   ;;  %v1806_v0 = vld [vmem:[%s1995_s28 + $0x74] ss:$0 sps:$4 sm:$0x11]  }
  0x4b   : > { %808 = vrot.lane.b32.xlu0 %v1578_v10, %s1917_s7  ;;  %v1533_v10 = vcombine.low %v214_v1, %v2115_v19  ;;  %v415_v16 = vrot.slane %v1788_v5, 1  ;;  %v505_v42 = vsel %vm493_vm1, %v503_v36, %v504_v37  ;;  %v1445_v1 = vld [vmem:[%s1995_s28 + $0x60] sm:$0xc]  ;;  %v1808_v5 = vld [vmem:[%s1995_s28 + $0x44] ss:$0 sps:$4 sm:$0x11]  }
  0x4c   : > { %v645_v7 = vrot.slane %v1804_v58, 1  ;;  %v660_v14 = vrot.slane %v1806_v0, 1  ;;  %v1447_v17 = vld [vmem:[%s1995_s28 + $0x6c] sm:$0xc]  ;;  %v1439_v24 = vld [vmem:[%s1995_s28 + $0x3c] sm:$0xc] }
  0x4d   : > { %v512_v22 = vrot.slane %v1533_v10, 2  ;;  %v416_v26 = vsel %vm404_vm0, %v414_v13, %v415_v16  ;;  %v1437_v10 = vld [vmem:[%s1995_s28 + $0x30] sm:$0xc]  ;;  %v648_v16 = vrot.slane %v1808_v5, 1  ;;  %v1453_v50 = vld [vmem:[%s1995_s28 + $0x48] sm:$0xf] }
  0x4e   : > { %902 = vrot.lane.b32.xlu1 %v884_v21, %s1918_s8  ;;  %v428_v21 = vsel %vm404_vm0, %v426_v6, %v427_v9  ;;  %v644_v6 = vrot.slane %v1549_v57, 1  ;;  %v1565_v20 = vcombine.low %v1437_v10, %v1406_v44  ;;  %v1841_v29 = vld [vmem:[%s2491_s1 + $0x10] ss:$0 sps:$4 sm:$0x33]  }
  0x4f   : > { %894 = vrot.lane.b32.xlu0 %v872_v28, %s1918_s8  ;;  %v501_v28 = vrot.slane %v1792_v18, 2  ;;  %v514_v31 = vsel %vm493_vm1, %v512_v22, %v513_v23  ;;  %1674 = vmatprep.subr.msk.bf16.mxu0 %vm1186_vm2, %v1841_v29  ;;  %v1188_v36 = vsel %vm1186_vm2, %v1841_v29, 0  ;;  %v1822_v58 = vld [vmem:[%s1995_s28 + $0x80] ss:$0 sps:$4 sm:$0x11]  }
  0x50   : > { %v646_v18 = vsel %vm404_vm0, %v644_v6, %v645_v7  ;;  %1675 = vmatprep.subr.msk.bf16.mxu1 %vm1186_vm2, %v1841_v29  ;;  %1647 = vmatpush3.bf16.msra.mxu0 %v1188_v36  ;;  %v1824_v0 = vld [vmem:[%s1995_s28 + $0x50] ss:$0 sps:$4 sm:$0x11]   ;;  %v889_v5 = vrot.slane %v1822_v58, 1 }
  0x51   : > { %v502_v35 = vsel %vm493_vm1, %v500_v27, %v501_v28  ;;  %v1814_v28 = vld [vmem:[%s1995_s28 + $0x74] ss:$0 sps:$4 sm:$0x33]   ;;  %1671 = vmatpush3.bf16.msra.mxu1 %v1188_v36  ;;  %v1828_v7 = vld [vmem:[%s1995_s28 + $0x8c] ss:$0 sps:$4 sm:$0x11]  }
  0x52   : > { %904 = vrot.lane.b32.xlu1 %v887_v34, %s1918_s8  ;;  %v516_v34 = vrot.slane %v1794_v25, 2  ;;  %v1842_v25 = vld [vmem:[%s2491_s1 + $0x8] sm:$0xff]  }
  0x53   : > { %896 = vrot.lane.b32.xlu0 %v875_v40, %s1918_s8  ;;  %v1414_v40 = vld [vmem:[%s1995_s28 + $0x64] sm:$0xf]  ;;  %1648 = vmatprep.subr.bf16.mxu0 %v1842_v25 }
  0x54   : > { %v517_v38 = vsel %vm493_vm1, %v515_v33, %v516_v34  ;;  %v1543_v45 = vcombine.low %v1413_v39, %v1414_v40  ;;  %v1557_v48 = vcombine.low %v1429_v41, %v1414_v40  ;;  %v1573_v9 = vcombine.low %v1445_v1, %v1414_v40  ;;  %v1845_v40 = vld [vmem:[%s2491_s1] sm:$0xff]   ;;  %1669 = vmatprep.subr.bf16.mxu1 %v1842_v25 }
  0x55   : > { %v1567_v34 = vcombine.low %v1439_v24, %v2202_v54  ;;  %v748_v39 = vrot.slane %v1814_v28, 2  ;;  %1649 = vmatpush3.bf16.msra.mxu0 %v1842_v25  ;;  %1672 = vmatpush3.bf16.msra.mxu1 %v1842_v25  ;;  %v1487_v28 = vld [vmem:[%s1995_s28 + $0x54] sm:$0xc] }
  0x56   : > { %990 = vrot.lane.b32.xlu1 %v972_v47, %s1919_s9  ;;  %v1416_v47 = vld [vmem:[%s1995_s28 + $0x70] sm:$0xf]  ;;  %v656_v61 = vrot.slane %v1557_v48, 1  ;;  %v744_v22 = vrot.slane %v1573_v9, 2  ;;  %1650 = vmatprep.subr.bf16.mxu0 %v1845_v40  ;;  %v1493_v9 = vld [vmem:[%s1995_s28 + $0x78] sm:$0xc] }
  0x57   : > { %982 = vrot.lane.b32.xlu0 %v960_v53, %s1919_s9  ;;  %v1539_v53 = vcombine.low %v1405_v43, %v1406_v44  ;;  %v1544_v60 = vcombine.low %v1415_v46, %v1416_v47  ;;  %v1559_v63 = vcombine.low %v1431_v55, %v1416_v47  ;;  %v1575_v27 = vcombine.low %v1447_v17, %v1416_v47  ;;  %v1462_v46 = vld [vmem:[%s1995_s28 + $0x7c] sm:$0xf]  ;;  %v1477_v47 = vld [vmem:[%s1995_s28 + $0x78] sm:$0xe]  ;;  %v1464_v55 = vld [vmem:[%s1995_s28 + $0x88] sm:$0xf] }
  0x58   : > { %v658_v11 = vsel %vm404_vm0, %v656_v61, %v657_v62  ;;  %1670 = vmatprep.subr.bf16.mxu1 %v1845_v40  ;;  %v1597_v57 = vcombine.low %v1477_v47, %v1462_v46  ;;  %v1479_v61 = vld [vmem:[%s1995_s28 + $0x84] sm:$0xe]  ;;  %v1456_v62 = vld [vmem:[%s1995_s28 + $0x58] sm:$0xf] }
  0x59   : > { %v659_v13 = vrot.slane %v1559_v63, 1  ;;  %1651 = vmatpush3.bf16.msra.mxu0 %v1845_v40  ;;  %1673 = vmatpush3.bf16.msra.mxu1 %v1845_v40  ;;  %v1599_v6 = vcombine.low %v1479_v61, %v1464_v55  ;;  %v1840_v40 = vld [vmem:[%s1995_s28 + $0x5c] ss:$0 sps:$4 sm:$0x33]  }
  0x5a   : > { %441 = vrot.lane.b32.xlu1 %v425_v59, %s1912_s29  ;;  %v1423_v59 = vld [vmem:[%s1995_s28 + $0x3c] sm:$0xe] }
  0x5b   : > { %433 = vrot.lane.b32.xlu0 %v413_v2, %s1912_s29  ;;  %v1540_v2 = vcombine.low %v1407_v51, %v2202_v54  ;;  %v1551_v3 = vcombine.low %v1423_v59, %v2202_v54  ;;  %v1454_v51 = vld [vmem:[%s1995_s28 + $0x4c] sm:$0xf]  ;;  %v1469_v54 = vld [vmem:[%s1995_s28 + $0x48] sm:$0xe]  ;;  %v891_v17 = vrot.slane %v1599_v6, 1 }
  0x5c   : > { %v1579_v59 = vcombine.low %v1453_v50, %v1454_v51  ;;  %v1589_v63 = vcombine.low %v1469_v54, %v1454_v51 }
  0x5e   : > { %992 = vrot.lane.b32.xlu1 %v975_v8, %s1919_s9  ;;  %v1810_v8 = vld [vmem:[%s1995_s28 + $0x68] ss:$0 sps:$4 sm:$0x33]   ;;  %v876_v10 = vrot.slane %v1589_v63, 1 }
  0x5f   : > { %984 = vrot.lane.b32.xlu0 %v963_v15, %s1919_s9  ;;  %v647_v15 = vrot.slane %v1551_v3, 1  ;;  %v745_v23 = vrot.slane %v1810_v8, 2  ;;  %v888_v3 = vrot.slane %v1597_v57, 1 }
  0x61   : > { %v649_v30 = vsel %vm404_vm0, %v647_v15, %v648_v16  ;;  %v746_v37 = vsel %vm493_vm1, %v744_v22, %v745_v23  ;;  %v1485_v15 = vld [vmem:[%s1995_s28 + $0x48] sm:$0xc]  ;;  %v890_v16 = vsel %vm404_vm0, %v888_v3, %v889_v5  ;;  %v1495_v22 = vld [vmem:[%s1995_s28 + $0x84] sm:$0xc] }
  0x62   : > { %443 = vrot.lane.b32.xlu1 %v428_v21, %s1912_s29  ;;  %v1812_v21 = vld [vmem:[%s1995_s28 + $0x38] ss:$0 sps:$4 sm:$0x33]  }
  0x63   : > { %435 = vrot.lane.b32.xlu0 %v416_v26, %s1912_s29  ;;  %v661_v26 = vsel %vm404_vm0, %v659_v13, %v660_v14  ;;  %v733_v33 = vrot.slane %v1812_v21, 2  ;;  %v1830_v14 = vld [vmem:[%s1995_s28 + $0x5c] ss:$0 sps:$4 sm:$0x11]  }
  0x64   : > { %v1834_v21 = vld [vmem:[%s1995_s28 + $0x80] ss:$0 sps:$4 sm:$0x33]   ;;  %v880_v25 = vrot.slane %v1830_v14, 1 }
  0x66   : > { %530 = vrot.lane.b32.xlu1 %v514_v31, %s1913_s30  ;;  %v732_v31 = vrot.slane %v1565_v20, 2  ;;  %v1613_v20 = vcombine.low %v1493_v9, %v1462_v46  ;;  %v178_v9 = vld [vmem:[%s1995_s28 + $0x30] sm:$0xf] }
  0x67   : > { %522 = vrot.lane.b32.xlu0 %v502_v35, %s1913_s30  ;;  %v1816_v35 = vld [vmem:[%s1995_s28 + $0x44] ss:$0 sps:$4 sm:$0x33]  }
  0x68   : > { %v734_v41 = vsel %vm493_vm1, %v732_v31, %v733_v33  ;;  %v736_v43 = vrot.slane %v1816_v35, 2  ;;  %v977_v31 = vrot.slane %v1834_v21, 2  ;;  %v1615_v33 = vcombine.low %v1495_v22, %v1464_v55 }
  0x6a   : > { %532 = vrot.lane.b32.xlu1 %v517_v38, %s1913_s30  ;;  %v747_v38 = vrot.slane %v1575_v27, 2  ;;  %v1836_v27 = vld [vmem:[%s1995_s28 + $0x50] ss:$0 sps:$4 sm:$0x33]  }
  0x6b   : > { %524 = vrot.lane.b32.xlu0 %v505_v42, %s1913_s30  ;;  %v735_v42 = vrot.slane %v1567_v34, 2  ;;  %v1838_v34 = vld [vmem:[%s1995_s28 + $0x8c] ss:$0 sps:$4 sm:$0x33]  }
  0x6c   : > { %v749_v44 = vsel %vm493_vm1, %v747_v38, %v748_v39  ;;  %v965_v38 = vrot.slane %v1836_v27, 2  ;;  %v1607_v39 = vcombine.low %v1487_v28, %v1456_v62 }
  0x6d   : > { %v737_v48 = vsel %vm493_vm1, %v735_v42, %v736_v43  ;;  %v979_v43 = vrot.slane %v1615_v33, 2 }
  0x6e   : > { %586 = vrot.lane.b32.xlu1 %v1543_v45, %s1914_s4  ;;  %v1461_v45 = vld [vmem:[%s1995_s28 + $0x78] sm:$0xf]  ;;  %v967_v47 = vrot.slane %v1607_v39, 2 }
  0x6f   : > { %578 = vrot.lane.b32.xlu0 %v1539_v53, %s1914_s4  ;;  %v1583_v52 = vcombine.low %v1461_v45, %v1462_v46  ;;  %v1463_v53 = vld [vmem:[%s1995_s28 + $0x84] sm:$0xf] }
  0x70   : > { %v1584_v1 = vcombine.low %v1463_v53, %v1464_v55 }
  0x72   : > { %588 = vrot.lane.b32.xlu1 %v1544_v60, %s1914_s4  ;;  %v1455_v60 = vld [vmem:[%s1995_s28 + $0x54] sm:$0xf] }
  0x73   : > { %580 = vrot.lane.b32.xlu0 %v1540_v2, %s1914_s4  ;;  %v1471_v2 = vld [vmem:[%s1995_s28 + $0x54] sm:$0xe]  ;;  %v1580_v8 = vcombine.low %v1455_v60, %v1456_v62  ;;  %s1634_s4 = sshll.u32 %s1963_s16, 11  ;;  %s2449_s16 = scalar_lea.sflag [#allocation3], %s161_s25 }
  0x74   : > { %v1591_v13 = vcombine.low %v1471_v2, %v1456_v62 }
  0x76   : > { %674 = vrot.lane.b32.xlu1 %v658_v11, %s1915_s5  ;;  %v877_v11 = vrot.slane %v1824_v0, 1  ;;  %v879_v24 = vrot.slane %v1591_v13, 1  ;;  %v1501_v13 = vcombine.low %v178_v9, %v2009_v12 }
  0x77   : > { %666 = vrot.lane.b32.xlu0 %v646_v18, %s1915_s5  ;;  %v892_v18 = vrot.slane %v1828_v7, 1 }
  0x78   : > { %v878_v23 = vsel %vm404_vm0, %v876_v10, %v877_v11  ;;  %v881_v36 = vsel %vm404_vm0, %v879_v24, %v880_v25  ;;  %v170_v11 = vld [vmem:[%s1995_s28] sm:$0xf] }
  0x79   : > { %v893_v29 = vsel %vm404_vm0, %v891_v17, %v892_v18 }
  0x7a   : > { %676 = vrot.lane.b32.xlu1 %v661_v26, %s1915_s5  ;;  %v1605_v26 = vcombine.low %v1485_v15, %v1454_v51  ;;  %v1497_v15 = vcombine.low %v170_v11, %v2001_v4 }
  0x7b   : > { %668 = vrot.lane.b32.xlu0 %v649_v30, %s1915_s5  ;;  %v976_v30 = vrot.slane %v1613_v20, 2  ;;  %v180_v20 = vld [vmem:[%s1995_s28 + $0x3c] sm:$0xf] }
  0x7d   : > { %v978_v42 = vsel %vm493_vm1, %v976_v30, %v977_v31 }
  0x7e   : > { %762 = vrot.lane.b32.xlu1 %v746_v37, %s1916_s6  ;;  %v964_v37 = vrot.slane %v1605_v26, 2  ;;  %v1848_v26 = vld [vmem:[%s1995_s28 + $0x40] sm:$0xf] }
  0x7f   : > { %754 = vrot.lane.b32.xlu0 %v734_v41, %s1916_s6  ;;  %v1502_v27 = vcombine.low %v180_v20, %v1848_v26 }
  0x80   : > { %v966_v46 = vsel %vm493_vm1, %v964_v37, %v965_v38 }
  0x82   : > { %764 = vrot.lane.b32.xlu1 %v749_v44, %s1916_s6  ;;  %v980_v44 = vrot.slane %v1838_v34, 2  ;;  %v1849_v34 = vld [vmem:[%s1995_s28 + $0x10] sm:$0xf] }
  0x83   : > { %756 = vrot.lane.b32.xlu0 %v737_v48, %s1916_s6  ;;  %v968_v48 = vrot.slane %v1840_v40, 2 }
  0x84   : > { %v981_v51 = vsel %vm493_vm1, %v979_v43, %v980_v44 }
  0x85   : > { %v969_v53 = vsel %vm493_vm1, %v967_v47, %v968_v48 }
  0x86   : > { %818 = vrot.lane.b32.xlu1 %v1583_v52, %s1917_s7 }
  0x87   : > { %810 = vrot.lane.b32.xlu0 %v1579_v59, %s1917_s7 }
  0x8a   : > { %820 = vrot.lane.b32.xlu1 %v1584_v1, %s1917_s7 }
  0x8b   : > { %812 = vrot.lane.b32.xlu0 %v1580_v8, %s1917_s7 }
  0x8e   : > { %906 = vrot.lane.b32.xlu1 %v890_v16, %s1918_s8 }
  0x8f   : > { %898 = vrot.lane.b32.xlu0 %v878_v23, %s1918_s8  ;;  %v172_v23 = vld [vmem:[%s1995_s28 + $0xc] sm:$0xf] }
  0x90   : > { %v2281_v35 = vpop.permute.xlu1 %431 }
  0x91   : > { %v430_v41 = vpop.permute.xlu0 %429 }
  0x92   : > { %908 = vrot.lane.b32.xlu1 %v893_v29, %s1918_s8  ;;  %v1001_v22 = vsel %vm998_vm4, %v1497_v15, %v430_v41 }
  0x93   : > { %900 = vrot.lane.b32.xlu0 %v881_v36, %s1918_s8  ;;  %v1498_v36 = vcombine.low %v172_v23, %v1849_v34  ;;  %v182_v23 = vld [vmem:[%s1995_s28 + $0x48] sm:$0xf]  ;;  %s2440_s8 = scalar_lea.hbm %s2493_s3, %s1634_s4 }
  0x94   : > { %v2288_v45 = vpop.permute.xlu1 %439  ;;  %v1503_v26 = vcombine.low %v182_v23, %v2115_v19 }
  0x95   : > { %v438_v50 = vpop.permute.xlu0 %437  ;;  %v1004_v48 = vsel %vm998_vm4, %v1498_v36, %v2281_v35 }
  0x96   : > { %994 = vrot.lane.b32.xlu1 %v978_v42, %s1919_s9  ;;  %v1013_v17 = vsel %vm998_vm4, %v1501_v13, %v438_v50  ;;  %v1016_v42 = vsel %vm998_vm4, %v1502_v27, %v2288_v45 }
  0x97   : > { %986 = vrot.lane.b32.xlu0 %v966_v46, %s1919_s9 }
  0x98   : > { %v527_v52 = vpop.permute.xlu1 %526 }
  0x99   : > { %v519_v54 = vpop.permute.xlu0 %518  ;;  %v1033_v21 = vsel %vm1023_vm3, %v1013_v17, %v527_v52 }
  0x9a   : > { %996 = vrot.lane.b32.xlu1 %v981_v51, %s1919_s9  ;;  %v1025_v24 = vsel %vm1023_vm3, %v1001_v22, %v519_v54 }
  0x9b   : > { %988 = vrot.lane.b32.xlu0 %v969_v53, %s1919_s9 }
  0x9c   : > { %v529_v55 = vpop.permute.xlu1 %528 }
  0x9d   : > { %v2297_v57 = vpop.permute.xlu0 %520  ;;  %v1035_v46 = vsel %vm1023_vm3, %v1016_v42, %v529_v55 }
  0x9e   : > { %v1027_v45 = vsel %vm1023_vm3, %v1004_v48, %v2297_v57 }
  0xa0   : > { %v583_v58 = vpop.permute.xlu1 %582 }
  0xa1   : > { %v575_v59 = vpop.permute.xlu0 %574  ;;  %v1050_v12 = vsel %vm1040_vm5, %v1033_v21, %v583_v58 }
  0xa2   : > { %v1042_v28 = vsel %vm1040_vm5, %v1025_v24, %v575_v59 }
  0xa4   : > { %v585_v60 = vpop.permute.xlu1 %584 }
  0xa5   : > { %v2299_v61 = vpop.permute.xlu0 %576  ;;  %v1052_v50 = vsel %vm1040_vm5, %v1035_v46, %v585_v60 }
  0xa6   : > { %v1044_v53 = vsel %vm1040_vm5, %v1027_v45, %v2299_v61 }
  0xa8   : > { %v671_v62 = vpop.permute.xlu1 %670 }
  0xa9   : > { %v663_v63 = vpop.permute.xlu0 %662  ;;  %v1067_v25 = vsel %vm1057_vm6, %v1050_v12, %v671_v62 }
  0xaa   : > { %v1059_v31 = vsel %vm1057_vm6, %v1042_v28, %v663_v63  ;;  %v184_v28 = vld [vmem:[%s1995_s28 + $0x54] sm:$0xf] }
  0xab   : > { %v1504_v34 = vcombine.low %v184_v28, %v2142_v49 }
  0xac   : > { %v673_v0 = vpop.permute.xlu1 %672 }
  0xad   : > { %v2301_v1 = vpop.permute.xlu0 %664  ;;  %v1069_v52 = vsel %vm1057_vm6, %v1052_v50, %v673_v0 }
  0xae   : > { %v1061_v58 = vsel %vm1057_vm6, %v1044_v53, %v2301_v1 }
  0xb0   : > { %v759_v2 = vpop.permute.xlu1 %758 }
  0xb1   : > { %v751_v3 = vpop.permute.xlu0 %750  ;;  %v1084_v29 = vsel %vm1074_vm7, %v1067_v25, %v759_v2  ;;  %v174_v25 = vld [vmem:[%s1995_s28 + $0x18] sm:$0xf] }
  0xb2   : > { %v1076_v37 = vsel %vm1074_vm7, %v1059_v31, %v751_v3  ;;  %v176_v31 = vld [vmem:[%s1995_s28 + $0x24] sm:$0xf]  ;;  %s1399_s28 = sshll.u32 %s161_s25, 7 }
  0xb3   : > { %s2407_s29 = scalar_lea.vmem [#allocation2], %s1399_s28 }
  0xb4   : > { %v761_v5 = vpop.permute.xlu1 %760  ;;  %s1333_s5 = sshll.u32 %s2407_s29, 4  ;;  %s2444_s5 = int_to_ptr.vmem [resolvable:$true] %s1333_s5 }
  0xb5   : > { %v753_v6 = vpop.permute.xlu0 %752  ;;  %v1086_v54 = vsel %vm1074_vm7, %v1069_v52, %v761_v5  ;;  %s1850_s9 = scalar_lea.vmem %s2444_s5, 2048  ;;  %p1857_p0 = scmp.lt.s32.totalorder %s2444_s5, %s1855_s11 }
  0xb6   : > { %v1078_v59 = vsel %vm1074_vm7, %v1061_v58, %v753_v6  ;;  %p1851_p11 = scmp.ne.s32.totalorder %s2444_s5, %s1850_s9  ;;  %p1858_p1 = scmp.lt.s32.totalorder %s1856_s17, %s1850_s9 }
  0xb8   : > { %v815_v7 = vpop.permute.xlu1 %814  ;;  %p1852_p12 = pnand %p1851_p11, %p1980_p5  ;;  %p1859_p2 = por %p1858_p1, %p1857_p0 }
  0xb9   : > { %v807_v8 = vpop.permute.xlu0 %806  ;;  %v1101_v33 = vsel %vm1091_vm8, %v1084_v29, %v815_v7  ;;  %v1499_v29 = vcombine.low %v174_v25, %v2127_v32 }
  0xba   : > { %v1093_v40 = vsel %vm1091_vm8, %v1076_v37, %v807_v8  ;;  %p1853_p13 = pneg %p1852_p12 }
  0xbc   : > { %v817_v10 = vpop.permute.xlu1 %816  ;;  %p1860_p3 = pnand %p1859_p2, %p1853_p13 }
  0xbd   : > { %v809_v14 = vpop.permute.xlu0 %808  ;;  %v1103_v35 = vsel %vm1091_vm8, %v1086_v54, %v817_v10 }
  0xbe   : > { %v1095_v57 = vsel %vm1091_vm8, %v1078_v59, %v809_v14 }
  0xc0   : > { %v903_v16 = vpop.permute.xlu1 %902 }
  0xc1   : > { %v895_v18 = vpop.permute.xlu0 %894  ;;  %v1118_v38 = vsel %vm1108_vm9, %v1101_v33, %v903_v16 }
  0xc2   : > { %v1110_v43 = vsel %vm1108_vm9, %v1093_v40, %v895_v18 }
  0xc4   : > { %v905_v4 = vpop.permute.xlu1 %904 }
  0xc5   : > { %v897_v30 = vpop.permute.xlu0 %896  ;;  %v1120_v60 = vsel %vm1108_vm9, %v1103_v35, %v905_v4 }
  0xc6   : > { %v1112_v0 = vsel %vm1108_vm9, %v1095_v57, %v897_v30 }
  0xc8   : > { %v991_v39 = vpop.permute.xlu1 %990 }
  0xc9   : > { %v1135_v41 = vsel %vm1125_vm10, %v1118_v38, %v991_v39  ;;  %v983_v44 = vpop.permute.xlu0 %982  ;;  %v1500_v39 = vcombine.low %v176_v31, %v2150_v56 }
  0xca   : > { %1660 = vmatprep.mubr.msk.bf16.mxu1 %vm1169_vm11, %v1135_v41  ;;  %v1127_v47 = vsel %vm1125_vm10, %v1110_v43, %v983_v44 }
  0xcb   : > { %1652 = vmatprep.mubr.msk.bf16.mxu0 %vm1169_vm11, %v1127_v47 }
  0xcc   : > { %v442_v51 = vpop.permute.xlu1 %441 }
  0xcd   : > { %v434_v55 = vpop.permute.xlu0 %433  ;;  %v1019_v33 = vsel %vm998_vm4, %v1503_v26, %v442_v51 }
  0xce   : > { %v1007_v38 = vsel %vm998_vm4, %v1499_v29, %v434_v55 }
  0xd0   : > { %v993_v62 = vpop.permute.xlu1 %992 }
  0xd1   : > { %v1137_v63 = vsel %vm1125_vm10, %v1120_v60, %v993_v62  ;;  %v985_v61 = vpop.permute.xlu0 %984 }
  0xd2   : > { %1661 = vmatmul.mubr.msk.bf16.vlgmr.msra.gmra.mxu1 %vm1169_vm11, %v1137_v63  ;;  %v1129_v2 = vsel %vm1125_vm10, %v1112_v0, %v985_v61 }
  0xd3   : > { %1653 = vmatmul.mubr.msk.bf16.vlgmr.msra.gmra.mxu0 %vm1169_vm11, %v1129_v2 }
  0xd4   : > { %v444_v1 = vpop.permute.xlu1 %443 }
  0xd5   : > { %v436_v3 = vpop.permute.xlu0 %435  ;;  %v1022_v42 = vsel %vm998_vm4, %v1504_v34, %v444_v1 }
  0xd6   : > { %v1010_v48 = vsel %vm998_vm4, %v1500_v39, %v436_v3 }
  0xd8   : > { %v531_v5 = vpop.permute.xlu1 %530 }
  0xd9   : > { %v523_v6 = vpop.permute.xlu0 %522  ;;  %v1037_v37 = vsel %vm1023_vm3, %v1019_v33, %v531_v5 }
  0xda   : > { %v1029_v41 = vsel %vm1023_vm3, %v1007_v38, %v523_v6 }
  0xdc   : > { %v533_v7 = vpop.permute.xlu1 %532 }
  0xdd   : > { %v525_v8 = vpop.permute.xlu0 %524  ;;  %v1039_v46 = vsel %vm1023_vm3, %v1022_v42, %v533_v7 }
  0xde   : > { %v1031_v53 = vsel %vm1023_vm3, %v1010_v48, %v525_v8 }
  0xe0   : > { %v587_v9 = vpop.permute.xlu1 %586 }
  0xe1   : > { %v579_v10 = vpop.permute.xlu0 %578  ;;  %v1054_v40 = vsel %vm1040_vm5, %v1037_v37, %v587_v9  ;;  %v2400_v9 = vld [vmem:[%s2492_s2] ss:$0 sm:$0xff] }
  0xe2   : > { %v1046_v43 = vsel %vm1040_vm5, %v1029_v41, %v579_v10 }
  0xe4   : > { %v589_v11 = vpop.permute.xlu1 %588 }
  0xe5   : > { %v581_v13 = vpop.permute.xlu0 %580  ;;  %v1056_v50 = vsel %vm1040_vm5, %v1039_v46, %v589_v11 }
  0xe6   : > { %v1048_v35 = vsel %vm1040_vm5, %v1031_v53, %v581_v13 }
  0xe8   : > { %v675_v14 = vpop.permute.xlu1 %674 }
  0xe9   : > { %v667_v15 = vpop.permute.xlu0 %666  ;;  %v1071_v32 = vsel %vm1057_vm6, %v1054_v40, %v675_v14 }
  0xea   : > { %v1063_v47 = vsel %vm1057_vm6, %v1046_v43, %v667_v15 }
  0xec   : > { %v677_v16 = vpop.permute.xlu1 %676 }
  0xed   : > { %v669_v17 = vpop.permute.xlu0 %668  ;;  %v1073_v54 = vsel %vm1057_vm6, %v1056_v50, %v677_v16 }
  0xee   : > { %v1065_v57 = vsel %vm1057_vm6, %v1048_v35, %v669_v17 }
  0xf0   : > { %v763_v18 = vpop.permute.xlu1 %762 }
  0xf1   : > { %v755_v20 = vpop.permute.xlu0 %754  ;;  %v1088_v49 = vsel %vm1074_vm7, %v1071_v32, %v763_v18 }
  0xf2   : > { %v1080_v51 = vsel %vm1074_vm7, %v1063_v47, %v755_v20 }
  0xf4   : > { %v765_v21 = vpop.permute.xlu1 %764 }
  0xf5   : > { %v757_v22 = vpop.permute.xlu0 %756  ;;  %v1090_v59 = vsel %vm1074_vm7, %v1073_v54, %v765_v21 }
  0xf6   : > { %v1082_v61 = vsel %vm1074_vm7, %v1065_v57, %v757_v22 }
  0xf8   : > { %v819_v12 = vpop.permute.xlu1 %818 }
  0xf9   : > { %v811_v4 = vpop.permute.xlu0 %810  ;;  %v1105_v56 = vsel %vm1091_vm8, %v1088_v49, %v819_v12 }
  0xfa   : > { %v1097_v55 = vsel %vm1091_vm8, %v1080_v51, %v811_v4 }
  0xfc   : > { %v821_v24 = vpop.permute.xlu1 %820 }
  0xfd   : > { %v813_v27 = vpop.permute.xlu0 %812  ;;  %v1107_v63 = vsel %vm1091_vm8, %v1090_v59, %v821_v24 }
  0xfe   : > { %v1099_v3 = vsel %vm1091_vm8, %v1082_v61, %v813_v27 }
 0x100   : > { %v907_v30 = vpop.permute.xlu1 %906 }
 0x101   : > { %v899_v36 = vpop.permute.xlu0 %898  ;;  %v1122_v45 = vsel %vm1108_vm9, %v1105_v56, %v907_v30 }
 0x102   : > { %v1114_v60 = vsel %vm1108_vm9, %v1097_v55, %v899_v36 }
 0x104   : > { %v909_v19 = vpop.permute.xlu1 %908 }
 0x105   : > { %v901_v44 = vpop.permute.xlu0 %900  ;;  %v1124_v2 = vsel %vm1108_vm9, %v1107_v63, %v909_v19 }
 0x106   : > { %v1116_v6 = vsel %vm1108_vm9, %v1099_v3, %v901_v44 }
 0x108   : > { %v995_v52 = vpop.permute.xlu1 %994 }
 0x109   : > { %v1139_v58 = vsel %vm1125_vm10, %v1122_v45, %v995_v52  ;;  %v987_v62 = vpop.permute.xlu0 %986 }
 0x10a   : > { %1664 = vmatprep.mubr.msk.bf16.mxu1 %vm1169_vm11, %v1139_v58  ;;  %v1131_v0 = vsel %vm1125_vm10, %v1114_v60, %v987_v62 }
 0x10b   : > { %1656 = vmatprep.mubr.msk.bf16.mxu0 %vm1169_vm11, %v1131_v0 }
 0x10c   : > { %v997_v1 = vpop.permute.xlu1 %996 }
 0x10d   : > { %v1141_v5 = vsel %vm1125_vm10, %v1124_v2, %v997_v1  ;;  %v989_v7 = vpop.permute.xlu0 %988 }
 0x10e   : > { %1665 = vmatmul.mubr.msk.bf16.gmra.mxu1 %vm1169_vm11, %v1141_v5  ;;  %v1133_v8 = vsel %vm1125_vm10, %v1116_v6, %v989_v7 }
 0x10f   : > { %1657 = vmatmul.mubr.msk.bf16.gmra.mxu0 %vm1169_vm11, %v1133_v8 }
 0x192   : > { %v1662_v10 = vpop.f32.mrf.mxu1 }
 0x193   : > { %v1265_v11 = vadd.f32 %v1662_v10, %v2400_v9  ;;  %v1654_v13 = vpop.f32.mrf.mxu0 }
 0x194   : > { %v1256_v14 = vpop.f32.mrf.mxu1  ;;  %v1233_v15 = vadd.f32 %v1654_v13, %v2400_v9 }
 0x195   : > { %v1297_v16 = vmax.f32 %v1265_v11, 0.0  ;;  %v1257_v17 = vadd.f32 %v2400_v9, %v1256_v14  ;;  %v1224_v18 = vpop.f32.mrf.mxu0 }
 0x196   : > { %v1663_v20 = vpop.f32.mrf.mxu1  ;;  %v1289_v21 = vmax.f32 %v1233_v15, 0.0  ;;  %v1225_v22 = vadd.f32 %v2400_v9, %v1224_v18 }
 0x197   : > { %1313 = vst [vmem:[%s2407_s29 + $0x50] sm:$0xff] %v1297_v16  ;;  %v1295_v12 = vmax.f32 %v1257_v17, 0.0  ;;  %v1268_v4 = vadd.f32 %v1663_v20, %v2400_v9  ;;  %v1655_v23 = vpop.f32.mrf.mxu0 }
 0x198   : > { %v1259_v24 = vpop.f32.mrf.mxu1  ;;  %1305 = vst [vmem:[%s2407_s29 + $0x10] sm:$0xff] %v1289_v21  ;;  %v1287_v25 = vmax.f32 %v1225_v22, 0.0  ;;  %v1236_v26 = vadd.f32 %v1655_v23, %v2400_v9 }
 0x199   : > { %1311 = vst [vmem:[%s2407_s29 + $0x40] sm:$0xff] %v1295_v12  ;;  %v1298_v27 = vmax.f32 %v1268_v4, 0.0  ;;  %v1260_v28 = vadd.f32 %v2400_v9, %v1259_v24  ;;  %v1227_v29 = vpop.f32.mrf.mxu0 }
 0x19a   : > { %1303 = vst [vmem:[%s2407_s29] sm:$0xff] %v1287_v25  ;;  %v1290_v30 = vmax.f32 %v1236_v26, 0.0  ;;  %v1228_v31 = vadd.f32 %v2400_v9, %v1227_v29 }
 0x19b   : > { %1314 = vst [vmem:[%s2407_s29 + $0x58] sm:$0xff] %v1298_v27  ;;  %v1296_v33 = vmax.f32 %v1260_v28, 0.0 }
 0x19c   : > { %1306 = vst [vmem:[%s2407_s29 + $0x18] sm:$0xff] %v1290_v30  ;;  %v1288_v34 = vmax.f32 %v1228_v31, 0.0 }
 0x19d   : > { %1312 = vst [vmem:[%s2407_s29 + $0x48] sm:$0xff] %v1296_v33 }
 0x19e   : > { %1304 = vst [vmem:[%s2407_s29 + $0x8] sm:$0xff] %v1288_v34 }
 0x1ce   : > { %v1666_v36 = vpop.f32.mrf.mxu1 }
 0x1cf   : > { %v1281_v37 = vadd.f32 %v1666_v36, %v2400_v9  ;;  %v1658_v38 = vpop.f32.mrf.mxu0 }
 0x1d0   : > { %v1272_v39 = vpop.f32.mrf.mxu1  ;;  %v1249_v40 = vadd.f32 %v1658_v38, %v2400_v9 }
 0x1d1   : > { %v1301_v19 = vmax.f32 %v1281_v37, 0.0  ;;  %v1273_v41 = vadd.f32 %v2400_v9, %v1272_v39  ;;  %v1240_v32 = vpop.f32.mrf.mxu0 }
 0x1d2   : > { %v1667_v42 = vpop.f32.mrf.mxu1  ;;  %v1293_v43 = vmax.f32 %v1249_v40, 0.0  ;;  %v1241_v49 = vadd.f32 %v2400_v9, %v1240_v32 }
 0x1d3   : > { %1317 = vst [vmem:[%s2407_s29 + $0x70] sm:$0xff] %v1301_v19  ;;  %v1299_v44 = vmax.f32 %v1273_v41, 0.0  ;;  %v1284_v46 = vadd.f32 %v1667_v42, %v2400_v9  ;;  %v1659_v47 = vpop.f32.mrf.mxu0 }
 0x1d4   : > { %v1275_v56 = vpop.f32.mrf.mxu1  ;;  %1309 = vst [vmem:[%s2407_s29 + $0x30] sm:$0xff] %v1293_v43  ;;  %v1291_v48 = vmax.f32 %v1241_v49, 0.0  ;;  %v1252_v50 = vadd.f32 %v1659_v47, %v2400_v9 }
 0x1d5   : > { %1315 = vst [vmem:[%s2407_s29 + $0x60] sm:$0xff] %v1299_v44  ;;  %v1302_v51 = vmax.f32 %v1284_v46, 0.0  ;;  %v1276_v45 = vadd.f32 %v2400_v9, %v1275_v56  ;;  %v1243_v52 = vpop.f32.mrf.mxu0 }
 0x1d6   : > { %1307 = vst [vmem:[%s2407_s29 + $0x20] sm:$0xff] %v1291_v48  ;;  %v1294_v53 = vmax.f32 %v1252_v50, 0.0  ;;  %v1244_v54 = vadd.f32 %v2400_v9, %v1243_v52 }
 0x1d7   : > { %1318 = vst [vmem:[%s2407_s29 + $0x78] sm:$0xff] %v1302_v51  ;;  %v1300_v55 = vmax.f32 %v1276_v45, 0.0 }
 0x1d8   : > { %1310 = vst [vmem:[%s2407_s29 + $0x38] sm:$0xff] %v1294_v53  ;;  %v1292_v58 = vmax.f32 %v1244_v54, 0.0 }
 0x1d9   : > { %1316 = vst [vmem:[%s2407_s29 + $0x68] sm:$0xff] %v1300_v55 }
 0x1da   : > { %1308 = vst [vmem:[%s2407_s29 + $0x28] sm:$0xff] %v1292_v58 }
 0x1db   : > { %1863 = shalt.err (!%p1860_p3)
}
 0x1dc   : > { %s1864_s19 = scalar_lea.hbm %s2440_s8, 2048  ;;  %s1868_s25 = scalar_lea.hbm %s2493_s3, 8192 }
 0x1dd   : > { %p1865_p4 = scmp.ne.s32.totalorder %s2440_s8, %s1864_s19  ;;  %p1869_p9 = scmp.lt.s32.totalorder %s2440_s8, %s2493_s3 }
 0x1de   : > { %p1870_p10 = scmp.lt.s32.totalorder %s1868_s25, %s1864_s19 }
 0x1df   : > { %p1866_p7 = pnand %p1865_p4, %p1980_p5 }
 0x1e0   : > { %p1871_p11 = por %p1870_p10, %p1869_p9 }
 0x1e1   : > { %p1867_p8 = pneg %p1866_p7 }
 0x1e3   : > { %p1872_p12 = pnand %p1871_p11, %p1867_p8 }
 0x1e5   : > { %1875 = shalt.err (!%p1872_p12)
}
 0x1e6   : > { %s1921_s28 = smov 128  }
 0x1e7   : > { %1677 = dma.vmem_to_hbm [thread:$0]  (%p1980_p5), %s2444_s5, 2048, %s2440_s8, %s2449_s16, %s1921_s28, %s1921_s28, %s1913_s30  }
 0x1e8 PF: > { %p1683_p13 = scmp.ge.s32.totalorder %s1910_s15, 2  ;;  %s1348_s29 = sand.u32 1, %s1898_s12  }
 0x1e9   : > { %s1349_s4 = scalar_lea.sflag [#allocation3], %s1348_s29 }
 0x1ea   : > { %p1680_p0 = pnand %p1683_p13, %p1984_p6 }
 0x1ec   : > { %p1681_p1 = pneg %p1680_p0 }
 0x1ee   : > { %1893 = dma.done.wait (%p1681_p1), %s1349_s4, 2048  }
 0x1ef   : > { %1895 = vsyncadd (%p1681_p1), %s1349_s4, 4294965248  ;;  %p13_p2 = scmp.ge.s32.totalorder %s1967_s18, 6   ;;  %s2496_s12 = smov %s1902_s13 }
 0x1f0   : > { %s2497_s13 = smov %s1906_s14  ;;  %s2498_s14 = smov %s1978_s21 }
 0x1f1   : > { %s2499_s15 = smov %s1967_s18  ;;  %15 = sbr.rel (!%p13_p2) target bundleno = 3 (0x3), region = 69 }
 0x1f6   :  { %1354 = vsyncpa [#allocation3], 1 }
 0x1f7   :  { %1356 = vsyncpa [#allocation3 + $0x1], 1 }

</bundles_post_ra>
